<compile_context>
chip_gen: v6e
topology: v6e:2x2x1
jax: 0.10.0
libtpu: 0.0.40
codegen_flags: <defaults>
</compile_context>

<pallas_src>
import functools

import jax
import jax.numpy as jnp
from jax import lax
from jax.experimental import pallas as pl
from jax.experimental.pallas import tpu as pltpu


def _cdiv(a, b):
    return -(-a // b)


def _round_up(x, m):
    return ((x + m - 1) // m) * m


def _sublane_multiple(dtype):
    # 8 for f32, 16 for bf16, 32 for int8/fp8 (packed sublane tiling).
    return max(8, 32 // jnp.dtype(dtype).itemsize)


# ---------------------------------------------------------------------------
# Parameter glue (spectral norm + class embeddings) in plain JAX.
# ---------------------------------------------------------------------------
def _l2normalize(v, eps=1e-4):
    # eps matches the reference module's l2normalize (0.0001).
    return v / (jnp.linalg.norm(v) + eps)


def spectral_norm_weight(w, u, power_iterations=1):
    """Power iteration; returns w / sigma.  w: (out, in), u: (out,)."""
    v = None
    for _ in range(power_iterations):
        v = _l2normalize(w.T @ u)
        u = _l2normalize(w @ v)
    sigma = u @ (w @ v)
    return w / sigma


# ---------------------------------------------------------------------------
# Kernels
# ---------------------------------------------------------------------------
def _cbn_fused_kernel(x_ref, gamma_ref, beta_ref, o_ref, *, eps, inv_count):
    """Single streaming pass per channel block.

    x_ref: (N, TC, HW) in input dtype; gamma/beta: (N, TC, 1) f32.
    Fused sum / sum-of-squares stats, then a single FMA per element.
    """
    x = x_ref[...].astype(jnp.float32)
    s = jnp.sum(x, axis=(0, 2), keepdims=True)          # (1, TC, 1)
    sq = jnp.sum(x * x, axis=(0, 2), keepdims=True)      # (1, TC, 1)
    mean = s * inv_count
    var = jnp.maximum(sq * inv_count - mean * mean, 0.0)
    inv_std = lax.rsqrt(var + eps)                        # EUP

    scale = gamma_ref[...] * inv_std                      # (N, TC, 1)
    shift = beta_ref[...] - mean * scale                  # (N, TC, 1)
    o_ref[...] = (x * scale + shift).astype(o_ref.dtype)


def _cbn_stats_kernel(x_ref, sum_ref, sumsq_ref, *, hw_valid, t_hw, needs_mask):
    """Accumulate per-channel sum / sum-of-squares over the HW grid axis.

    x_ref: (N, TC, T_HW).  sum/sumsq blocks (1, TC, 1) are resident across the
    hw axis (constant output block index) and act as accumulators.
    """
    h = pl.program_id(1)

    @pl.when(h == 0)
    def _():
        sum_ref[...] = jnp.zeros_like(sum_ref)
        sumsq_ref[...] = jnp.zeros_like(sumsq_ref)

    x = x_ref[...].astype(jnp.float32)
    if needs_mask:
        # One small (1,1,T_HW) lane mask; a single select keeps the ragged
        # out-of-bounds HW lanes out of both sums.
        lane = lax.broadcasted_iota(jnp.int32, (1, 1, t_hw), 2) + h * t_hw
        x = jnp.where(lane < hw_valid, x, 0.0)

    sum_ref[...] += jnp.sum(x, axis=(0, 2), keepdims=True)
    sumsq_ref[...] += jnp.sum(x * x, axis=(0, 2), keepdims=True)


def _cbn_apply_kernel(x_ref, scale_ref, shift_ref, o_ref):
    """Elementwise out = x * scale + shift (gamma/mean/var folded in wrapper)."""
    x = x_ref[...].astype(jnp.float32)
    o_ref[...] = (x * scale_ref[...] + shift_ref[...]).astype(o_ref.dtype)


# ---------------------------------------------------------------------------
# Tiling heuristics
# ---------------------------------------------------------------------------
def _pick_channel_tile(C, per_channel_bytes, block_bytes, sub):
    """Channel tile for the fused path: multiple of `sub` (or C itself) whose
    (N, tc, HW) x-block stays within ~block_bytes; capped so the channel grid
    keeps >= 4 blocks when C is large enough (v7x two-TensorCore sharding)."""
    tc_fit = (block_bytes // max(per_channel_bytes, 1)) // sub * sub
    tc_fit = max(sub, tc_fit)
    if C >= 4 * sub:
        tc_cap = _round_up(_cdiv(C, 4), sub)
        tc_fit = min(tc_fit, tc_cap)
    if tc_fit >= C:
        return C
    return int(tc_fit)


# ---------------------------------------------------------------------------
# Wrapper
# ---------------------------------------------------------------------------
def conditional_batch_norm_2d(x_nchw, y, w_gamma, u_gamma, w_beta, u_beta,
                              eps=1e-4, block_bytes=1 << 20):
    """x_nchw: (N, C, H, W); y: (N, K); w_*: (C, K); u_*: (C,)."""
    N, C, H, W = x_nchw.shape
    HW = H * W
    dtype = x_nchw.dtype
    itemsize = jnp.dtype(dtype).itemsize
    sub = _sublane_multiple(dtype)
    inv_count = 1.0 / float(N * HW)
    eps = float(eps)

    # --- parameter glue (tiny mat-vecs / matmuls) in plain JAX ---
    wg_sn = spectral_norm_weight(w_gamma.astype(jnp.float32), u_gamma.astype(jnp.float32))
    wb_sn = spectral_norm_weight(w_beta.astype(jnp.float32), u_beta.astype(jnp.float32))
    yf = y.astype(jnp.float32)
    gamma = yf @ wg_sn.T + 1.0                      # (N, C) f32
    beta = yf @ wb_sn.T                             # (N, C) f32

    x = x_nchw.reshape(N, C, HW)                    # free view, no HBM copy
    per_channel = N * HW * itemsize
    vmem_limit = 32 << 20                           # headroom, safe on v5e/v6e/v7x

    # =======================================================================
    # Path A: fused single-pass kernel (one read + one write of x).
    # =======================================================================
    if per_channel * min(C, sub) <= block_bytes:
        tc = _pick_channel_tile(C, per_channel, block_bytes, sub)
        c_blocks = _cdiv(C, tc)

        kernel = functools.partial(_cbn_fused_kernel, eps=eps, inv_count=inv_count)
        out = pl.pallas_call(
            kernel,
            out_shape=jax.ShapeDtypeStruct((N, C, HW), dtype),
            grid=(c_blocks,),
            in_specs=[
                pl.BlockSpec((N, tc, HW), lambda c: (0, c, 0)),
                pl.BlockSpec((N, tc, 1), lambda c: (0, c, 0)),
                pl.BlockSpec((N, tc, 1), lambda c: (0, c, 0)),
            ],
            out_specs=pl.BlockSpec((N, tc, HW), lambda c: (0, c, 0)),
            compiler_params=pltpu.CompilerParams(
                dimension_semantics=("parallel",),
                vmem_limit_bytes=vmem_limit),
        )(x, gamma[:, :, None], beta[:, :, None])
        return out.reshape(N, C, H, W)

    # =======================================================================
    # Path B: HW-tiled stats pass + elementwise apply pass (big N*H*W slabs).
    # =======================================================================
    tc = min(C, sub)
    t_hw = (block_bytes // max(N * tc * itemsize, 1)) // 128 * 128
    t_hw = max(128, t_hw)
    if t_hw >= HW:
        t_hw = HW                                   # full last dim: always legal
    c_blocks = _cdiv(C, tc)
    hw_blocks = _cdiv(HW, t_hw)
    needs_mask = (HW % t_hw) != 0

    stats_kernel = functools.partial(
        _cbn_stats_kernel, hw_valid=HW, t_hw=t_hw, needs_mask=needs_mask)
    sums, sumsqs = pl.pallas_call(
        stats_kernel,
        out_shape=(jax.ShapeDtypeStruct((1, C, 1), jnp.float32),
                   jax.ShapeDtypeStruct((1, C, 1), jnp.float32)),
        grid=(c_blocks, hw_blocks),
        in_specs=[pl.BlockSpec((N, tc, t_hw), lambda c, h: (0, c, h))],
        out_specs=(pl.BlockSpec((1, tc, 1), lambda c, h: (0, c, 0)),
                   pl.BlockSpec((1, tc, 1), lambda c, h: (0, c, 0))),
        compiler_params=pltpu.CompilerParams(
            dimension_semantics=("parallel", "arbitrary"),
            vmem_limit_bytes=vmem_limit),
    )(x)

    # Tiny per-channel finalize + fold gamma/beta into a single FMA.
    mean = sums * inv_count                                          # (1, C, 1)
    var = jnp.maximum(sumsqs * inv_count - mean * mean, 0.0)
    inv_std = lax.rsqrt(var + eps)                                   # (1, C, 1)
    scale = gamma[:, :, None] * inv_std                              # (N, C, 1)
    shift = beta[:, :, None] - mean * scale                          # (N, C, 1)

    out = pl.pallas_call(
        _cbn_apply_kernel,
        out_shape=jax.ShapeDtypeStruct((N, C, HW), dtype),
        grid=(c_blocks, hw_blocks),
        in_specs=[
            pl.BlockSpec((N, tc, t_hw), lambda c, h: (0, c, h)),
            pl.BlockSpec((N, tc, 1), lambda c, h: (0, c, 0)),
            pl.BlockSpec((N, tc, 1), lambda c, h: (0, c, 0)),
        ],
        out_specs=pl.BlockSpec((N, tc, t_hw), lambda c, h: (0, c, h)),
        compiler_params=pltpu.CompilerParams(
            dimension_semantics=("parallel", "parallel"),
            vmem_limit_bytes=vmem_limit),
    )(x, scale, shift)
    return out.reshape(N, C, H, W)


# ---------------------------------------------------------------------------
# Pure-JAX reference mirroring the PyTorch forward (training-mode BN).
# ---------------------------------------------------------------------------
def _reference(x, y, w_gamma, u_gamma, w_beta, u_beta, eps=1e-4):
    wg_sn = spectral_norm_weight(w_gamma, u_gamma)
    wb_sn = spectral_norm_weight(w_beta, u_beta)
    gamma = y @ wg_sn.T + 1.0                        # (N, C)
    beta = y @ wb_sn.T                               # (N, C)
    mean = jnp.mean(x, axis=(0, 2, 3), keepdims=True)
    var = jnp.mean(jnp.square(x - mean), axis=(0, 2, 3), keepdims=True)
    norm = (x - mean) / jnp.sqrt(var + eps)
    return gamma[:, :, None, None] * norm + beta[:, :, None, None]


if __name__ == "__main__":
    root = jax.random.PRNGKey(0)
    k1, k2, k3 = jax.random.split(root, 3)

    def make_inputs(key, N, C, H, W, K):
        kx, ky, kwg, kwb, kug, kub = jax.random.split(key, 6)
        x = jax.random.normal(kx, (N, C, H, W), dtype=jnp.float32)
        y = jax.random.normal(ky, (N, K), dtype=jnp.float32)
        w_gamma = jax.random.normal(kwg, (C, K), dtype=jnp.float32) * 0.1
        w_beta = jax.random.normal(kwb, (C, K), dtype=jnp.float32) * 0.1
        u_gamma = _l2normalize(jax.random.normal(kug, (C,), dtype=jnp.float32))
        u_beta = _l2normalize(jax.random.normal(kub, (C,), dtype=jnp.float32))
        return x, y, w_gamma, u_gamma, w_beta, u_beta

    # 1) canonical small shape -> fused single-pass path (tc == C, full-HW block)
    args = make_inputs(k1, N=2, C=4, H=16, W=16, K=8)
    out = jax.block_until_ready(conditional_batch_norm_2d(*args))
    ref = _reference(*args)
    assert out.shape == (2, 4, 16, 16)
    assert jnp.allclose(out, ref, atol=3e-4, rtol=3e-4), "fused path mismatch"

    # 2) ragged channel grid + HW not a multiple of 128, still fused path
    args = make_inputs(k2, N=2, C=40, H=9, W=9, K=8)
    out = jax.block_until_ready(conditional_batch_norm_2d(*args))
    ref = _reference(*args)
    assert jnp.allclose(out, ref, atol=3e-4, rtol=3e-4), "ragged fused path mismatch"

    # 3) tiny block budget -> forces the HW-tiled stats+apply path (with hw mask)
    args = make_inputs(k3, N=2, C=10, H=12, W=12, K=8)
    out = jax.block_until_ready(conditional_batch_norm_2d(*args, block_bytes=4096))
    ref = _reference(*args)
    assert jnp.allclose(out, ref, atol=3e-4, rtol=3e-4), "tiled path mismatch"

    print("KERNEL_OK")
</pallas_src>

<mosaic_0001>
module attributes {stable_mosaic.version = 11 : i64} {
  func.func @_cbn_fused_kernel(%arg0: i32, %arg1: memref<2x4x256xf32, #tpu.memory_space<vmem>>, %arg2: memref<2x4x1xf32, #tpu.memory_space<vmem>>, %arg3: memref<2x4x1xf32, #tpu.memory_space<vmem>>, %arg4: memref<2x4x256xf32, #tpu.memory_space<vmem>>) attributes {dimension_semantics = [#tpu.dimension_semantics<parallel>], iteration_bounds = array<i64: 1>, scalar_prefetch = 0 : i64, scratch_operands = 0 : i64, tpu.core_type = #tpu.core_type<tc>, window_params = [{transform_indices = @transform_0, window_bounds = array<i64: 2, 4, 256>}, {transform_indices = @transform_1, window_bounds = array<i64: 2, 4, 1>}, {transform_indices = @transform_2, window_bounds = array<i64: 2, 4, 1>}, {transform_indices = @transform_3, window_bounds = array<i64: 2, 4, 256>}]} {
    %c0 = arith.constant 0 : index
    %c0_0 = arith.constant 0 : index
    %c0_1 = arith.constant 0 : index
    %0 = vector.load %arg1[%c0, %c0_0, %c0_1] : memref<2x4x256xf32, #tpu.memory_space<vmem>>, vector<2x4x256xf32>
    %cst = arith.constant dense<0.000000e+00> : vector<4xf32>
    %1 = vector.multi_reduction <add>, %0, %cst [0, 2] : vector<2x4x256xf32> to vector<4xf32>
    %2 = vector.shape_cast %1 : vector<4xf32> to vector<1x4x1xf32>
    %3 = arith.mulf %0, %0 : vector<2x4x256xf32>
    %cst_2 = arith.constant dense<0.000000e+00> : vector<4xf32>
    %4 = vector.multi_reduction <add>, %3, %cst_2 [0, 2] : vector<2x4x256xf32> to vector<4xf32>
    %5 = vector.shape_cast %4 : vector<4xf32> to vector<1x4x1xf32>
    %cst_3 = arith.constant 0.001953125 : f32
    %6 = vector.broadcast %cst_3 : f32 to vector<1x4x1xf32>
    %7 = arith.mulf %2, %6 : vector<1x4x1xf32>
    %cst_4 = arith.constant 0.001953125 : f32
    %8 = vector.broadcast %cst_4 : f32 to vector<1x4x1xf32>
    %9 = arith.mulf %5, %8 : vector<1x4x1xf32>
    %10 = arith.mulf %7, %7 : vector<1x4x1xf32>
    %11 = arith.subf %9, %10 : vector<1x4x1xf32>
    %cst_5 = arith.constant 0.000000e+00 : f32
    %12 = vector.broadcast %cst_5 : f32 to vector<1x4x1xf32>
    %13 = arith.maximumf %11, %12 : vector<1x4x1xf32>
    %cst_6 = arith.constant 9.99999974E-5 : f32
    %14 = vector.broadcast %cst_6 : f32 to vector<1x4x1xf32>
    %15 = arith.addf %13, %14 : vector<1x4x1xf32>
    %16 = math.rsqrt %15 : vector<1x4x1xf32>
    %c0_7 = arith.constant 0 : index
    %c0_8 = arith.constant 0 : index
    %c0_9 = arith.constant 0 : index
    %17 = vector.load %arg2[%c0_7, %c0_8, %c0_9] : memref<2x4x1xf32, #tpu.memory_space<vmem>>, vector<2x4x1xf32>
    %18 = vector.broadcast %16 : vector<1x4x1xf32> to vector<2x4x1xf32>
    %19 = arith.mulf %17, %18 : vector<2x4x1xf32>
    %c0_10 = arith.constant 0 : index
    %c0_11 = arith.constant 0 : index
    %c0_12 = arith.constant 0 : index
    %20 = vector.load %arg3[%c0_10, %c0_11, %c0_12] : memref<2x4x1xf32, #tpu.memory_space<vmem>>, vector<2x4x1xf32>
    %21 = vector.broadcast %7 : vector<1x4x1xf32> to vector<2x4x1xf32>
    %22 = arith.mulf %21, %19 : vector<2x4x1xf32>
    %23 = arith.subf %20, %22 : vector<2x4x1xf32>
    %24 = vector.broadcast %19 : vector<2x4x1xf32> to vector<2x4x256xf32>
    %25 = arith.mulf %0, %24 : vector<2x4x256xf32>
    %26 = vector.broadcast %23 : vector<2x4x1xf32> to vector<2x4x256xf32>
    %27 = arith.addf %25, %26 : vector<2x4x256xf32>
    %c0_13 = arith.constant 0 : index
    %c0_14 = arith.constant 0 : index
    %c0_15 = arith.constant 0 : index
    %28 = vector.load %arg4[%c0_13, %c0_14, %c0_15] : memref<2x4x256xf32, #tpu.memory_space<vmem>>, vector<2x4x256xf32>
    tpu.vector_store %arg4[%c0_13, %c0_14, %c0_15], %27 {strides = array<i32>} : memref<2x4x256xf32, #tpu.memory_space<vmem>>, vector<2x4x256xf32>,
    return
  }
  func.func @transform_0(%arg0: i32) -> (i32, i32, i32) {
    %c0_i32 = arith.constant 0 : i32
    %c0_i32_0 = arith.constant 0 : i32
    %c0_i32_1 = arith.constant 0 : i32
    return %c0_i32, %arg0, %c0_i32_0 : i32, i32, i32
  }
  func.func @transform_1(%arg0: i32) -> (i32, i32, i32) {
    %c0_i32 = arith.constant 0 : i32
    %c0_i32_0 = arith.constant 0 : i32
    %c0_i32_1 = arith.constant 0 : i32
    return %c0_i32, %arg0, %c0_i32_0 : i32, i32, i32
  }
  func.func @transform_2(%arg0: i32) -> (i32, i32, i32) {
    %c0_i32 = arith.constant 0 : i32
    %c0_i32_0 = arith.constant 0 : i32
    %c0_i32_1 = arith.constant 0 : i32
    return %c0_i32, %arg0, %c0_i32_0 : i32, i32, i32
  }
  func.func @transform_3(%arg0: i32) -> (i32, i32, i32) {
    %c0_i32 = arith.constant 0 : i32
    %c0_i32_0 = arith.constant 0 : i32
    %c0_i32_1 = arith.constant 0 : i32
    return %c0_i32, %arg0, %c0_i32_0 : i32, i32, i32
  }
}

</mosaic_0001>

<bundles_post_ra>
// kernel: tpu_custom_call.1
= control target key start
LH: loop header
LB: loop body
LE: loop exit
PB: predicated region body
PF: predicated region fallthrough
CT: control target
= control target key end

     0   :  { %vm23_vm0 = vcmask 1043456   ;;  %s240_s0 = inlined_call_operand.vmem [shape: f32[2,4,256], index: 0, kind: input, shape index: {}]   ;;  %s241_s1 = inlined_call_operand.vmem [shape: f32[2,4,1], index: 1, kind: input, shape index: {}]   ;;  %s242_s2 = inlined_call_operand.vmem [shape: f32[2,4,1], index: 2, kind: input, shape index: {}]   ;;  %s243_s3 = inlined_call_operand.hbm [shape: f32[2,4,256], index: 3, kind: output, shape index: {}]  }
   0x1   :  { %v198_v0 = vld [vmem:[%s240_s0] sm:$0xff]  ;;  %v203_v1 = vld [vmem:[%s240_s0 + $0x8] sm:$0xff] }
   0x2   :  { %8 = vsyncpa [#allocation3], 0  ;;  %v19_v2 = vcombine.high %v198_v0, %v198_v0  ;;  %v20_v3 = vcombine.high %v203_v1, %v203_v1  ;;  %v24_v4 = vsel %vm23_vm0, %v198_v0, 0.0  ;;  %v33_v5 = vmul.f32 %v198_v0, %v198_v0  ;;  %v57_v31 = vld [vmem:[%s241_s1] sm:$0xf] }
   0x3   :  { %v34_v6 = vmul.f32 %v203_v1, %v203_v1  ;;  %v27_v8 = vsel %vm23_vm0, %v203_v1, 0.0  ;;  %v170_v22 = vmov 0   ;;  %v58_v32 = vld [vmem:[%s241_s1 + $0x4] sm:$0xf]  ;;  %v61_v36 = vld [vmem:[%s242_s2] sm:$0xf]  ;;  %v78_v44 = vlaneseq }
   0x4   :  { %v25_v7 = vsel %vm23_vm0, %v19_v2, 0.0  ;;  %v37_v10 = vcombine.high %v33_v5, %v33_v5  ;;  %v41_v12 = vsel %vm23_vm0, %v33_v5, 0.0  ;;  %v29_v13 = vsel %vm23_vm0, %v20_v3, 0.0  ;;  %142 = vset.pattern.permute.xlu1 %v170_v22  ;;  %143 = vset.pattern.permute.xlu0 %v170_v22  ;;  %v62_v40 = vld [vmem:[%s242_s2 + $0x4] sm:$0xf]  ;;  %s172_s1 = smov [#allocation2]  }
   0x5   :  { %v26_v9 = vadd.f32 %v25_v7, %v24_v4  ;;  %v38_v11 = vcombine.high %v34_v6, %v34_v6  ;;  %v44_v16 = vsel %vm23_vm0, %v34_v6, 0.0  ;;  %v171_v42 = vmov 839922192   ;;  %s126_s2 = sshll.u32 %s172_s1, 4  ;;  %s127_s2 = int_to_ptr.vmem [resolvable:$true] %s126_s2 }
   0x6   :  { %v42_v15 = vsel %vm23_vm0, %v37_v10, 0.0  ;;  %v76_v43 = vunpack.c.l.s4 %v171_v42  ;;  %v79_v46 = vshrl.u32 %v78_v44, 7  ;;  %s148_s23 = scalar_lea.vmem %s127_s2, 256  ;;  %p153_p1 = scmp.lt.s32.totalorder %s127_s2, %s127_s2 }
   0x7   :  { %v28_v14 = vadd.f32 %v27_v8, %v26_v9  ;;  %v43_v17 = vadd.f32 %v42_v15, %v41_v12  ;;  %v46_v19 = vsel %vm23_vm0, %v38_v11, 0.0  ;;  %p149_p0 = scmp.ne.s32.totalorder %s127_s2, %s148_s23  ;;  %p154_p2 = scmp.lt.s32.totalorder %s148_s23, %s148_s23 }
   0x8   :  { %v77_v45 = vunpack.c.0.s8 %v76_v43 }
   0x9   :  { %v30_v18 = vadd.f32 %v29_v13, %v28_v14  ;;  %v45_v20 = vadd.f32 %v44_v16, %v43_v17  ;;  %p155_p3 = por %p154_p2, %p153_p1 }
   0xa   :  { %v80_v47 = vsub.s32 %v77_v45, %v79_v46 }
   0xb   :  { %31 = vadd.xlane.f32.xlu0 %v30_v18  ;;  %v47_v21 = vadd.f32 %v46_v19, %v45_v20  ;;  %p156_p4 = pnand %p155_p3, %p149_p0 }
   0xf   :  { %48 = vadd.xlane.f32.xlu0 %v47_v21 }
  0x94   :  { %v32_v23 = vpop.xlane.xlu0 %31 }
  0x95   :  { %v50_v24 = vmul.f32 0.001953125, %v32_v23 }
  0x97   :  { %v52_v26 = vmul.f32 %v50_v24, %v50_v24 }
  0x98   :  { %v49_v25 = vpop.xlane.xlu0 %48 }
  0x99   :  { %v51_v27 = vmul.f32 0.001953125, %v49_v25 }
  0x9b   :  { %v53_v28 = vsub.f32 %v51_v27, %v52_v26 }
  0x9d   :  { %v54_v29 = vmax.f32 %v53_v28, 0.0 }
  0x9f   :  { %v55_v30 = vadd.f32 0.0001, %v54_v29 }
  0xa1   :  { %146 = vrsqrt.f32 %v55_v30 }
  0xae   :  { %v147_v33 = vpop.eup %146 }
  0xaf   :  { %v59_v34 = vmul.f32 %v147_v33, %v57_v31  ;;  %v60_v35 = vmul.f32 %v147_v33, %v58_v32 }
  0xb1   :  { %69 = vperm.xlu1 %142, %v59_v34   ;;  %v63_v37 = vmul.f32 %v59_v34, %v50_v24  ;;  %v64_v39 = vmul.f32 %v60_v35, %v50_v24 }
  0xb3   :  { %v65_v38 = vsub.f32 %v61_v36, %v63_v37  ;;  %v66_v41 = vsub.f32 %v62_v40, %v64_v39 }
  0xb5   :  { %73 = vperm.xlu1 %142, %v60_v35   ;;  %95 = vperm.xlu0 %143, %v65_v38  }
  0xb9   :  { %99 = vperm.xlu1 %142, %v66_v41  }
 0x12c   :  { %v70_v48 = vpop.permute.xlu1 %69 }
 0x12d   :  { %v81_v49 = vrot.slane %v70_v48, %v80_v47 }
 0x12f   :  { %v91_v52 = vmul.f32 %v81_v49, %v198_v0 }
 0x130   :  { %v74_v50 = vpop.permute.xlu1 %73  ;;  %v96_v51 = vpop.permute.xlu0 %95 }
 0x131   :  { %v88_v53 = vrot.slane %v74_v50, %v80_v47  ;;  %v107_v54 = vrot.slane %v96_v51, %v80_v47 }
 0x133   :  { %v117_v55 = vadd.f32 %v107_v54, %v91_v52  ;;  %v92_v57 = vmul.f32 %v88_v53, %v203_v1 }
 0x134   :  { %v100_v56 = vpop.permute.xlu1 %99 }
 0x135   :  { %119 = vst [vmem:[#allocation2] sm:$0xff] %v117_v55  ;;  %v114_v58 = vrot.slane %v100_v56, %v80_v47 }
 0x137   :  { %v118_v59 = vadd.f32 %v114_v58, %v92_v57 }
 0x139   :  { %120 = vst [vmem:[#allocation2 + $0x8] sm:$0xff] %v118_v59 }
 0x13a   :  { %159 = shalt.err (!%p156_p4)
}
 0x13b   :  { %s173_s24 = smov 128   ;;  %s174_s25 = smov 8  }
 0x13c   :  { %132 = dma.vmem_to_hbm [thread:$0]  %s127_s2, 256, %s243_s3, [#allocation3], %s173_s24, %s173_s24, %s174_s25  }
 0x13d   :  { %168 = dma.done.wait [#allocation3], 256  }
 0x13e   :  { %169 = vsyncadd [#allocation3], 4294967040 }
 0x13f   :  { %136 = vsyncpa [#allocation3], 1 }

</bundles_post_ra>
